<compile_context>
chip_gen: v5e
topology: v5e:2x2
jax: 0.10.0
libtpu: 0.0.40
codegen_flags: <defaults>
</compile_context>

<pallas_src>
from functools import partial

import jax
import jax.numpy as jnp
from jax.experimental import pallas as pl
from jax.experimental.pallas import tpu as pltpu

LANE = 128
SUBLANE = 8


def _round_up(x, m):
    return ((x + m - 1) // m) * m


def _classifier_kernel(x_ref, w_emb_ref, b_emb_ref, w_cls_ref, b_cls_ref, o_ref,
                       *, nph, phw, channels):
    """One batch tile: raw flattened NCHW rows -> logits.

    x_ref    : [tb, C*H*W] f32  raw input (pure view of NCHW; no host-side repack)
    w_emb_ref: [C, ph*W, Hp] bf16 stripe-patch embedding weight
    b_emb_ref: [1, Hp]     f32
    w_cls_ref: [Hp, Cp]    f32  classifier weight, pre-scaled by 1/P (mean folded in)
    b_cls_ref: [1, Cp]     f32
    o_ref    : [tb, Cp]    f32  logits (lane-dense)
    """
    tb = x_ref.shape[0]
    hp = b_emb_ref.shape[-1]
    w_emb = w_emb_ref[...]                         # resident, small

    pooled = jnp.zeros((tb, hp), jnp.float32)
    for i in range(nph):                           # stripe patches per image (static)
        acc = jnp.zeros((tb, hp), jnp.float32)
        for c in range(channels):                  # per-channel matmul, K = ph*W
            off = (c * nph + i) * phw              # 128-aligned lane slice of the raw rows
            xs = x_ref[:, off:off + phw].astype(jnp.bfloat16)
            acc = acc + jnp.dot(xs, w_emb[c], preferred_element_type=jnp.float32)
        # bias + tanh in f32 (no bf16 VPU/EUP on v5e); padded hidden lanes stay exactly 0
        pooled = pooled + jnp.tanh(acc + b_emb_ref[...])
    # classifier head in f32 (tiny; avoids a second bf16 truncation); 1/P already folded
    logits = jnp.dot(pooled, w_cls_ref[...], preferred_element_type=jnp.float32)
    o_ref[...] = logits + b_cls_ref[...]


def hf_wrapper_forward(x_nchw, params, patch_h=8):
    """x_nchw: [B, C, H, W] float32 (NCHW, as PyTorch) -> logits [B, num_classes]."""
    B, C, H, W = x_nchw.shape
    assert H % patch_h == 0, "H must be divisible by patch_h"
    nph = H // patch_h                  # stripe patches per image (= P)
    phw = patch_h * W                   # flattened stripe size per channel
    img = C * H * W                     # flattened image size
    P = nph

    w_emb, b_emb, w_cls, b_cls = params
    hidden = w_emb.shape[-1]
    num_classes = w_cls.shape[-1]
    Hp = _round_up(hidden, LANE)
    Cp = _round_up(num_classes, LANE)

    # lane-pad weights to 128 (unmasked vregs / lane-dense store); padding is numerically
    # inert: padded hidden lanes give tanh(0)=0 into zero classifier rows.
    w_emb_p = jnp.zeros((C, phw, Hp), jnp.bfloat16).at[:, :, :hidden].set(
        w_emb.astype(jnp.bfloat16))
    b_emb_p = jnp.zeros((1, Hp), jnp.float32).at[:, :hidden].set(b_emb)
    w_cls_p = jnp.zeros((Hp, Cp), jnp.float32).at[:hidden, :num_classes].set(
        w_cls / float(P))                                # fold mean-pool 1/P into weights
    b_cls_p = jnp.zeros((1, Cp), jnp.float32).at[:, :num_classes].set(b_cls)

    # Raw input consumed directly by the kernel: metadata-only reshape of NCHW, so the
    # only activation HBM traffic is one f32 read of x by the pipeline DMA.
    x_flat = x_nchw.reshape(B, img)

    # ---- per-generation VMEM budget & batch-tile selection ----
    try:
        vmem_cap = getattr(pltpu.get_tpu_info(), "vmem_capacity_bytes", 64 * 2**20)
    except Exception:
        vmem_cap = 64 * 2**20
    # ~half of physical VMEM, clamped to [32, 96] MiB (v7x: 64 MiB -> 32; v5e/v6e: 128 -> 64)
    vmem_limit = int(min(96 * 2**20, max(32 * 2**20, vmem_cap // 2)))

    # batch tile: largest multiple of 8 whose double-buffered input tile fits in about half
    # the budget, capped at 512 images / step.
    bytes_per_img = img * 4
    max_tb = max(SUBLANE,
                 (vmem_limit // 2) // (2 * bytes_per_img) // SUBLANE * SUBLANE)
    if B <= SUBLANE:
        tb = B                              # tiny demo batch: one step, no padding
    else:
        tb = int(min(512, max_tb))
        # keep >= 2 grid steps when the batch allows, so "parallel" spans both TCs (v7x)
        tb = max(SUBLANE, min(tb, _round_up(pl.cdiv(B, 2), SUBLANE)))
    b_pad = _round_up(B, tb)
    if b_pad != B:
        # TODO(synk): masked tail block instead of zero-padding (pad copies the tail rows).
        x_flat = jnp.concatenate(
            [x_flat, jnp.zeros((b_pad - B, img), x_flat.dtype)], axis=0)

    grid = (b_pad // tb,)
    kernel = partial(_classifier_kernel, nph=nph, phw=phw, channels=C)

    logits_padded = pl.pallas_call(
        kernel,
        out_shape=jax.ShapeDtypeStruct((b_pad, Cp), jnp.float32),
        grid=grid,
        in_specs=[
            pl.BlockSpec((tb, img), lambda i: (i, 0)),      # raw image rows, pipelined
            # resident weights / biases (constant block index)
            pl.BlockSpec((C, phw, Hp), lambda i: (0, 0, 0)),
            pl.BlockSpec((1, Hp), lambda i: (0, 0)),
            pl.BlockSpec((Hp, Cp), lambda i: (0, 0)),
            pl.BlockSpec((1, Cp), lambda i: (0, 0)),
        ],
        out_specs=pl.BlockSpec((tb, Cp), lambda i: (i, 0)),
        compiler_params=pltpu.CompilerParams(
            dimension_semantics=("parallel",),              # batch tiles shard across TCs
            vmem_limit_bytes=vmem_limit,
        ),
    )(x_flat, w_emb_p, b_emb_p, w_cls_p, b_cls_p)

    return logits_padded[:B, :num_classes]


def init_params(key, C=4, H=16, W=16, patch_h=8, hidden=32, num_classes=10):
    phw = patch_h * W
    k1, k2, k3 = jax.random.split(key, 3)
    w_emb = jax.random.normal(k1, (C, phw, hidden), jnp.float32) * 0.05
    b_emb = jnp.zeros((1, hidden), jnp.float32)
    w_cls = jax.random.normal(k2, (hidden, num_classes), jnp.float32) * 0.1
    b_cls = jax.random.normal(k3, (1, num_classes), jnp.float32) * 0.01
    return (w_emb, b_emb, w_cls, b_cls)


def _reference_forward(x_nchw, params, patch_h=8):
    """Plain-JAX f32 reference of the same synthetic model (sanity check)."""
    B, C, H, W = x_nchw.shape
    nph = H // patch_h
    w_emb, b_emb, w_cls, b_cls = params
    hidden = w_emb.shape[-1]
    # stripe-patch extraction, D ordered (c, y, x) to match the kernel's weight layout
    patches = x_nchw.reshape(B, C, nph, patch_h * W)
    patches = jnp.transpose(patches, (0, 2, 1, 3)).reshape(B, nph, C * patch_h * W)
    h = jnp.tanh(patches @ w_emb.reshape(-1, hidden) + b_emb[0])
    pooled = h.mean(axis=1)
    return pooled @ w_cls + b_cls[0]


if __name__ == "__main__":
    key = jax.random.PRNGKey(0)
    kx, kp = jax.random.split(key)

    B, C, H, W = 2, 4, 16, 16
    patch_h = 8
    x = jax.random.normal(kx, (B, C, H, W), jnp.float32)     # NCHW, like PyTorch
    params = init_params(kp, C=C, H=H, W=W, patch_h=patch_h, hidden=32, num_classes=10)

    logits = hf_wrapper_forward(x, params, patch_h=patch_h)
    logits = jax.block_until_ready(logits)

    ref = _reference_forward(x, params, patch_h=patch_h)
    assert logits.shape == (B, 10)
    # bf16 embedding-matmul inputs with f32 accumulation -> bf16-appropriate tolerance
    assert jnp.allclose(logits, ref, atol=3e-2, rtol=3e-2), float(jnp.abs(logits - ref).max())

    print("KERNEL_OK")
</pallas_src>

<mosaic_0001>
module attributes {stable_mosaic.version = 11 : i64} {
  func.func @_classifier_kernel(%arg0: i32, %arg1: memref<2x1024xf32, #tpu.memory_space<vmem>>, %arg2: memref<4x128x128xbf16, #tpu.memory_space<vmem>>, %arg3: memref<1x128xf32, #tpu.memory_space<vmem>>, %arg4: memref<128x128xf32, #tpu.memory_space<vmem>>, %arg5: memref<1x128xf32, #tpu.memory_space<vmem>>, %arg6: memref<2x128xf32, #tpu.memory_space<vmem>>) attributes {dimension_semantics = [#tpu.dimension_semantics<parallel>], iteration_bounds = array<i64: 1>, scalar_prefetch = 0 : i64, scratch_operands = 0 : i64, tpu.core_type = #tpu.core_type<tc>, window_params = [{transform_indices = @transform_0, window_bounds = array<i64: 2, 1024>}, {pipeline_mode = #tpu.pipeline_mode<synchronous>, transform_indices = @transform_1, window_bounds = array<i64: 4, 128, 128>}, {pipeline_mode = #tpu.pipeline_mode<synchronous>, transform_indices = @transform_2, window_bounds = array<i64: 1, 128>}, {pipeline_mode = #tpu.pipeline_mode<synchronous>, transform_indices = @transform_3, window_bounds = array<i64: 128, 128>}, {pipeline_mode = #tpu.pipeline_mode<synchronous>, transform_indices = @transform_4, window_bounds = array<i64: 1, 128>}, {transform_indices = @transform_5, window_bounds = array<i64: 2, 128>}]} {
    %c0 = arith.constant 0 : index
    %c0_0 = arith.constant 0 : index
    %c0_1 = arith.constant 0 : index
    %0 = vector.load %arg2[%c0, %c0_0, %c0_1] : memref<4x128x128xbf16, #tpu.memory_space<vmem>>, vector<4x128x128xbf16>
    %cst = arith.constant 0.000000e+00 : f32
    %1 = vector.broadcast %cst : f32 to vector<2x128xf32>
    %cst_2 = arith.constant 0.000000e+00 : f32
    %2 = vector.broadcast %cst_2 : f32 to vector<2x128xf32>
    %c0_3 = arith.constant 0 : index
    %c0_4 = arith.constant 0 : index
    %3 = vector.load %arg1[%c0_3, %c0_4] : memref<2x1024xf32, #tpu.memory_space<vmem>>, vector<2x128xf32>
    %4 = arith.truncf %3 : vector<2x128xf32> to vector<2x128xbf16>
    %5 = vector.extract_strided_slice %0 {offsets = [0, 0, 0], sizes = [1, 128, 128], strides = [1, 1, 1]} : vector<4x128x128xbf16> to vector<1x128x128xbf16>
    %6 = vector.shape_cast %5 : vector<1x128x128xbf16> to vector<128x128xbf16>
    %cst_5 = arith.constant dense<0.000000e+00> : vector<2x128xf32>
    %7 = tpu.matmul %4, %6, %cst_5 {dimension_numbers = #tpu.dot_dimension_numbers<[1], [0], [0], [1], [0, 0, 1, 1], [], []>} : vector<2x128xbf16>, vector<128x128xbf16>, vector<2x128xf32> -> vector<2x128xf32>
    %8 = arith.addf %2, %7 : vector<2x128xf32>
    %c0_6 = arith.constant 0 : index
    %c256 = arith.constant 256 : index
    %9 = vector.load %arg1[%c0_6, %c256] : memref<2x1024xf32, #tpu.memory_space<vmem>>, vector<2x128xf32>
    %10 = arith.truncf %9 : vector<2x128xf32> to vector<2x128xbf16>
    %11 = vector.extract_strided_slice %0 {offsets = [1, 0, 0], sizes = [1, 128, 128], strides = [1, 1, 1]} : vector<4x128x128xbf16> to vector<1x128x128xbf16>
    %12 = vector.shape_cast %11 : vector<1x128x128xbf16> to vector<128x128xbf16>
    %cst_7 = arith.constant dense<0.000000e+00> : vector<2x128xf32>
    %13 = tpu.matmul %10, %12, %cst_7 {dimension_numbers = #tpu.dot_dimension_numbers<[1], [0], [0], [1], [0, 0, 1, 1], [], []>} : vector<2x128xbf16>, vector<128x128xbf16>, vector<2x128xf32> -> vector<2x128xf32>
    %14 = arith.addf %8, %13 : vector<2x128xf32>
    %c0_8 = arith.constant 0 : index
    %c512 = arith.constant 512 : index
    %15 = vector.load %arg1[%c0_8, %c512] : memref<2x1024xf32, #tpu.memory_space<vmem>>, vector<2x128xf32>
    %16 = arith.truncf %15 : vector<2x128xf32> to vector<2x128xbf16>
    %17 = vector.extract_strided_slice %0 {offsets = [2, 0, 0], sizes = [1, 128, 128], strides = [1, 1, 1]} : vector<4x128x128xbf16> to vector<1x128x128xbf16>
    %18 = vector.shape_cast %17 : vector<1x128x128xbf16> to vector<128x128xbf16>
    %cst_9 = arith.constant dense<0.000000e+00> : vector<2x128xf32>
    %19 = tpu.matmul %16, %18, %cst_9 {dimension_numbers = #tpu.dot_dimension_numbers<[1], [0], [0], [1], [0, 0, 1, 1], [], []>} : vector<2x128xbf16>, vector<128x128xbf16>, vector<2x128xf32> -> vector<2x128xf32>
    %20 = arith.addf %14, %19 : vector<2x128xf32>
    %c0_10 = arith.constant 0 : index
    %c768 = arith.constant 768 : index
    %21 = vector.load %arg1[%c0_10, %c768] : memref<2x1024xf32, #tpu.memory_space<vmem>>, vector<2x128xf32>
    %22 = arith.truncf %21 : vector<2x128xf32> to vector<2x128xbf16>
    %23 = vector.extract_strided_slice %0 {offsets = [3, 0, 0], sizes = [1, 128, 128], strides = [1, 1, 1]} : vector<4x128x128xbf16> to vector<1x128x128xbf16>
    %24 = vector.shape_cast %23 : vector<1x128x128xbf16> to vector<128x128xbf16>
    %cst_11 = arith.constant dense<0.000000e+00> : vector<2x128xf32>
    %25 = tpu.matmul %22, %24, %cst_11 {dimension_numbers = #tpu.dot_dimension_numbers<[1], [0], [0], [1], [0, 0, 1, 1], [], []>} : vector<2x128xbf16>, vector<128x128xbf16>, vector<2x128xf32> -> vector<2x128xf32>
    %26 = arith.addf %20, %25 : vector<2x128xf32>
    %c0_12 = arith.constant 0 : index
    %c0_13 = arith.constant 0 : index
    %27 = vector.load %arg3[%c0_12, %c0_13] : memref<1x128xf32, #tpu.memory_space<vmem>>, vector<1x128xf32>
    %28 = vector.broadcast %27 : vector<1x128xf32> to vector<2x128xf32>
    %29 = arith.addf %26, %28 : vector<2x128xf32>
    %30 = math.tanh %29 : vector<2x128xf32>
    %31 = arith.addf %1, %30 : vector<2x128xf32>
    %cst_14 = arith.constant 0.000000e+00 : f32
    %32 = vector.broadcast %cst_14 : f32 to vector<2x128xf32>
    %c0_15 = arith.constant 0 : index
    %c128 = arith.constant 128 : index
    %33 = vector.load %arg1[%c0_15, %c128] : memref<2x1024xf32, #tpu.memory_space<vmem>>, vector<2x128xf32>
    %34 = arith.truncf %33 : vector<2x128xf32> to vector<2x128xbf16>
    %35 = vector.extract_strided_slice %0 {offsets = [0, 0, 0], sizes = [1, 128, 128], strides = [1, 1, 1]} : vector<4x128x128xbf16> to vector<1x128x128xbf16>
    %36 = vector.shape_cast %35 : vector<1x128x128xbf16> to vector<128x128xbf16>
    %cst_16 = arith.constant dense<0.000000e+00> : vector<2x128xf32>
    %37 = tpu.matmul %34, %36, %cst_16 {dimension_numbers = #tpu.dot_dimension_numbers<[1], [0], [0], [1], [0, 0, 1, 1], [], []>} : vector<2x128xbf16>, vector<128x128xbf16>, vector<2x128xf32> -> vector<2x128xf32>
    %38 = arith.addf %32, %37 : vector<2x128xf32>
    %c0_17 = arith.constant 0 : index
    %c384 = arith.constant 384 : index
    %39 = vector.load %arg1[%c0_17, %c384] : memref<2x1024xf32, #tpu.memory_space<vmem>>, vector<2x128xf32>
    %40 = arith.truncf %39 : vector<2x128xf32> to vector<2x128xbf16>
    %41 = vector.extract_strided_slice %0 {offsets = [1, 0, 0], sizes = [1, 128, 128], strides = [1, 1, 1]} : vector<4x128x128xbf16> to vector<1x128x128xbf16>
    %42 = vector.shape_cast %41 : vector<1x128x128xbf16> to vector<128x128xbf16>
    %cst_18 = arith.constant dense<0.000000e+00> : vector<2x128xf32>
    %43 = tpu.matmul %40, %42, %cst_18 {dimension_numbers = #tpu.dot_dimension_numbers<[1], [0], [0], [1], [0, 0, 1, 1], [], []>} : vector<2x128xbf16>, vector<128x128xbf16>, vector<2x128xf32> -> vector<2x128xf32>
    %44 = arith.addf %38, %43 : vector<2x128xf32>
    %c0_19 = arith.constant 0 : index
    %c640 = arith.constant 640 : index
    %45 = vector.load %arg1[%c0_19, %c640] : memref<2x1024xf32, #tpu.memory_space<vmem>>, vector<2x128xf32>
    %46 = arith.truncf %45 : vector<2x128xf32> to vector<2x128xbf16>
    %47 = vector.extract_strided_slice %0 {offsets = [2, 0, 0], sizes = [1, 128, 128], strides = [1, 1, 1]} : vector<4x128x128xbf16> to vector<1x128x128xbf16>
    %48 = vector.shape_cast %47 : vector<1x128x128xbf16> to vector<128x128xbf16>
    %cst_20 = arith.constant dense<0.000000e+00> : vector<2x128xf32>
    %49 = tpu.matmul %46, %48, %cst_20 {dimension_numbers = #tpu.dot_dimension_numbers<[1], [0], [0], [1], [0, 0, 1, 1], [], []>} : vector<2x128xbf16>, vector<128x128xbf16>, vector<2x128xf32> -> vector<2x128xf32>
    %50 = arith.addf %44, %49 : vector<2x128xf32>
    %c0_21 = arith.constant 0 : index
    %c896 = arith.constant 896 : index
    %51 = vector.load %arg1[%c0_21, %c896] : memref<2x1024xf32, #tpu.memory_space<vmem>>, vector<2x128xf32>
    %52 = arith.truncf %51 : vector<2x128xf32> to vector<2x128xbf16>
    %53 = vector.extract_strided_slice %0 {offsets = [3, 0, 0], sizes = [1, 128, 128], strides = [1, 1, 1]} : vector<4x128x128xbf16> to vector<1x128x128xbf16>
    %54 = vector.shape_cast %53 : vector<1x128x128xbf16> to vector<128x128xbf16>
    %cst_22 = arith.constant dense<0.000000e+00> : vector<2x128xf32>
    %55 = tpu.matmul %52, %54, %cst_22 {dimension_numbers = #tpu.dot_dimension_numbers<[1], [0], [0], [1], [0, 0, 1, 1], [], []>} : vector<2x128xbf16>, vector<128x128xbf16>, vector<2x128xf32> -> vector<2x128xf32>
    %56 = arith.addf %50, %55 : vector<2x128xf32>
    %c0_23 = arith.constant 0 : index
    %c0_24 = arith.constant 0 : index
    %57 = vector.load %arg3[%c0_23, %c0_24] : memref<1x128xf32, #tpu.memory_space<vmem>>, vector<1x128xf32>
    %58 = vector.broadcast %57 : vector<1x128xf32> to vector<2x128xf32>
    %59 = arith.addf %56, %58 : vector<2x128xf32>
    %60 = math.tanh %59 : vector<2x128xf32>
    %61 = arith.addf %31, %60 : vector<2x128xf32>
    %c0_25 = arith.constant 0 : index
    %c0_26 = arith.constant 0 : index
    %62 = vector.load %arg4[%c0_25, %c0_26] : memref<128x128xf32, #tpu.memory_space<vmem>>, vector<128x128xf32>
    %cst_27 = arith.constant dense<0.000000e+00> : vector<2x128xf32>
    %63 = tpu.matmul %61, %62, %cst_27 {dimension_numbers = #tpu.dot_dimension_numbers<[1], [0], [0], [1], [0, 0, 1, 1], [], []>} : vector<2x128xf32>, vector<128x128xf32>, vector<2x128xf32> -> vector<2x128xf32>
    %c0_28 = arith.constant 0 : index
    %c0_29 = arith.constant 0 : index
    %64 = vector.load %arg5[%c0_28, %c0_29] : memref<1x128xf32, #tpu.memory_space<vmem>>, vector<1x128xf32>
    %65 = vector.broadcast %64 : vector<1x128xf32> to vector<2x128xf32>
    %66 = arith.addf %63, %65 : vector<2x128xf32>
    %c0_30 = arith.constant 0 : index
    %c0_31 = arith.constant 0 : index
    %67 = vector.load %arg6[%c0_30, %c0_31] : memref<2x128xf32, #tpu.memory_space<vmem>>, vector<2x128xf32>
    tpu.vector_store %arg6[%c0_30, %c0_31], %66 {strides = array<i32>} : memref<2x128xf32, #tpu.memory_space<vmem>>, vector<2x128xf32>,
    return
  }
  func.func @transform_0(%arg0: i32) -> (i32, i32) {
    %c0_i32 = arith.constant 0 : i32
    %c0_i32_0 = arith.constant 0 : i32
    return %arg0, %c0_i32 : i32, i32
  }
  func.func @transform_1(%arg0: i32) -> (i32, i32, i32) {
    %c0_i32 = arith.constant 0 : i32
    %c0_i32_0 = arith.constant 0 : i32
    %c0_i32_1 = arith.constant 0 : i32
    %c0_i32_2 = arith.constant 0 : i32
    return %c0_i32, %c0_i32_0, %c0_i32_1 : i32, i32, i32
  }
  func.func @transform_2(%arg0: i32) -> (i32, i32) {
    %c0_i32 = arith.constant 0 : i32
    %c0_i32_0 = arith.constant 0 : i32
    %c0_i32_1 = arith.constant 0 : i32
    return %c0_i32, %c0_i32_0 : i32, i32
  }
  func.func @transform_3(%arg0: i32) -> (i32, i32) {
    %c0_i32 = arith.constant 0 : i32
    %c0_i32_0 = arith.constant 0 : i32
    %c0_i32_1 = arith.constant 0 : i32
    return %c0_i32, %c0_i32_0 : i32, i32
  }
  func.func @transform_4(%arg0: i32) -> (i32, i32) {
    %c0_i32 = arith.constant 0 : i32
    %c0_i32_0 = arith.constant 0 : i32
    %c0_i32_1 = arith.constant 0 : i32
    return %c0_i32, %c0_i32_0 : i32, i32
  }
  func.func @transform_5(%arg0: i32) -> (i32, i32) {
    %c0_i32 = arith.constant 0 : i32
    %c0_i32_0 = arith.constant 0 : i32
    return %arg0, %c0_i32 : i32, i32
  }
}

</mosaic_0001>

<bundles_post_ra>
// kernel: tpu_custom_call.1
= control target key start
LH: loop header
LB: loop body
LE: loop exit
PB: predicated region body
PF: predicated region fallthrough
CT: control target
= control target key end

     0   :  { %10 = vsyncpa [#allocation3], 0  ;;  %s911_s0 = inlined_call_operand.hbm [shape: f32[2,1024], index: 0, kind: input, shape index: {}]   ;;  %s912_s1 = inlined_call_operand.hbm [shape: bf16[4,128,128], index: 1, kind: input, shape index: {}]   ;;  %s913_s2 = inlined_call_operand.vmem [shape: f32[1,128], index: 2, kind: input, shape index: {}]   ;;  %s914_s3 = inlined_call_operand.hbm [shape: f32[128,128], index: 3, kind: input, shape index: {}]   ;;  %s915_s4 = inlined_call_operand.vmem [shape: f32[1,128], index: 4, kind: input, shape index: {}]   ;;  %s916_s5 = inlined_call_operand.hbm [shape: f32[2,128], index: 5, kind: output, shape index: {}]  }
   0x1   :  { %11 = vsyncpa [#allocation6], 0  ;;  %s28_s20 = sshll.u32 %s912_s1, 4  ;;  %s29_s20 = int_to_ptr.hbm [resolvable:$true] %s28_s20 }
   0x2   :  { %12 = vsyncpa [#allocation4], 0  ;;  %s791_s21 = smov [#allocation5]   ;;  %s18_s25 = sshll.u32 %s911_s0, 4  ;;  %s19_s25 = int_to_ptr.hbm [resolvable:$true] %s18_s25 }
   0x3   :  { %s30_s22 = sshll.u32 %s791_s21, 4  ;;  %s792_s26 = smov 64   ;;  %s31_s22 = int_to_ptr.vmem [resolvable:$true] %s30_s22 }
   0x4   :  { %s793_s27 = smov 4   ;;  %s794_s28 = smov [#allocation2]  }
   0x5   :  { %36 = dma.hbm_to_vmem [thread:$0]  %s29_s20, 4096, %s31_s22, [#allocation6], %s792_s26, %s792_s26, %s793_s27  }
   0x6   :  { %s20_s29 = sshll.u32 %s794_s28, 4  ;;  %s43_s7 = sshll.u32 %s914_s3, 4  ;;  %s21_s29 = int_to_ptr.vmem [resolvable:$true] %s20_s29  ;;  %s44_s7 = int_to_ptr.hbm [resolvable:$true] %s43_s7 }
   0x7   :  { %23 = dma.hbm_to_vmem [thread:$0]  %s19_s25, 256, %s21_s29, [#allocation3]  }
   0x8   :  { %s795_s1 = smov [#allocation7]   ;;  %s796_s9 = smov 128  }
   0x9   :  { %s45_s8 = sshll.u32 %s795_s1, 4  ;;  %s797_s10 = smov 8   ;;  %s46_s8 = int_to_ptr.vmem [resolvable:$true] %s45_s8 }
   0xa   :  { %51 = dma.hbm_to_vmem [thread:$0]  %s44_s7, 2048, %s46_s8, [#allocation6], %s796_s9, %s796_s9, %s797_s10  }
   0xb   :  { %785 = dma.done.wait [#allocation3], 256  }
   0xc   :  { %786 = vsyncadd [#allocation3], 4294967040 }
   0xd   :  { %787 = dma.done.wait [#allocation6], 6144  }
   0xe   :  { %788 = vsyncadd [#allocation6], 4294961152  ;;  %v838_v0 = vld [vmem:[#allocation5 + $0x78] sm:$0xff]  ;;  %v848_v4 = vld [vmem:[#allocation5 + $0x70] sm:$0xff]  ;;  %s504_s16 = sshll.u32 %s916_s5, 4  ;;  %s505_s16 = int_to_ptr.hbm [resolvable:$true] %s504_s16 }
   0xf   :  { %v840_v1 = vld [vmem:[#allocation5 + $0x38] sm:$0xff]  ;;  %182 = vmatpush.bf16.msra.mxu0 %v838_v0  ;;  %v850_v5 = vld [vmem:[#allocation5 + $0x30] sm:$0xff]  ;;  %v860_v8 = vld [vmem:[#allocation5 + $0x68] sm:$0xff] }
  0x10   :  { %v842_v2 = vld [vmem:[#allocation5 + $0xb8] sm:$0xff]  ;;  %243 = vmatpush.bf16.msra.mxu1 %v840_v1  ;;  %v854_v6 = vld [vmem:[#allocation5 + $0xb0] sm:$0xff]  ;;  %v862_v9 = vld [vmem:[#allocation5 + $0x28] sm:$0xff] }
  0x11   :  { %v844_v3 = vld [vmem:[#allocation5 + $0xf8] sm:$0xff]  ;;  %306 = vmatpush.bf16.msra.mxu2 %v842_v2  ;;  %v856_v7 = vld [vmem:[#allocation5 + $0xf0] sm:$0xff]  ;;  %v866_v10 = vld [vmem:[#allocation5 + $0xa8] sm:$0xff] }
  0x12   :  { %370 = vmatpush.bf16.msra.mxu3 %v844_v3  ;;  %v868_v11 = vld [vmem:[#allocation5 + $0xe8] sm:$0xff]  ;;  %v872_v12 = vld [vmem:[#allocation5 + $0x60] sm:$0xff]  ;;  %v654_v16 = vld [vmem:[#allocation5 + $0x58] sm:$0xff] }
  0x13   :  { %183 = vmatpush.bf16.msra.mxu0 %v848_v4  ;;  %v874_v13 = vld [vmem:[#allocation5 + $0x20] sm:$0xff]  ;;  %v646_v17 = vld [vmem:[#allocation5 + $0x18] sm:$0xff]  ;;  %v653_v20 = vld [vmem:[#allocation5 + $0x50] sm:$0xff] }
  0x14   :  { %244 = vmatpush.bf16.msra.mxu1 %v850_v5  ;;  %v878_v14 = vld [vmem:[#allocation5 + $0xa0] sm:$0xff]  ;;  %v662_v18 = vld [vmem:[#allocation5 + $0x98] sm:$0xff]  ;;  %v645_v21 = vld [vmem:[#allocation5 + $0x10] sm:$0xff] }
  0x15   :  { %307 = vmatpush.bf16.msra.mxu2 %v854_v6  ;;  %v880_v15 = vld [vmem:[#allocation5 + $0xe0] sm:$0xff]  ;;  %v670_v19 = vld [vmem:[#allocation5 + $0xd8] sm:$0xff]  ;;  %v661_v22 = vld [vmem:[#allocation5 + $0x90] sm:$0xff] }
  0x16   :  { %371 = vmatpush.bf16.msra.mxu3 %v856_v7  ;;  %v669_v23 = vld [vmem:[#allocation5 + $0xd0] sm:$0xff]  ;;  %v652_v24 = vld [vmem:[#allocation5 + $0x48] sm:$0xff]  ;;  %v651_v28 = vld [vmem:[#allocation5 + $0x40] sm:$0xff] }
  0x17   :  { %184 = vmatpush.bf16.msra.mxu0 %v860_v8  ;;  %v644_v25 = vld [vmem:[#allocation5 + $0x8] sm:$0xff]  ;;  %v643_v29 = vld [vmem:[#allocation5] sm:$0xff]  ;;  %v256_v32 = vld [vmem:[#allocation2 + $0x8] sm:$0x3] }
  0x18   :  { %245 = vmatpush.bf16.msra.mxu1 %v862_v9  ;;  %v660_v26 = vld [vmem:[#allocation5 + $0x88] sm:$0xff]  ;;  %v659_v30 = vld [vmem:[#allocation5 + $0x80] sm:$0xff]  ;;  %v320_v33 = vld [vmem:[#allocation2 + $0xc] sm:$0x3]  ;;  %v257_v36 = vpack.c.bf16 %v256_v32, %v256_v32 }
  0x19   :  { %308 = vmatpush.bf16.msra.mxu2 %v866_v10  ;;  %v668_v27 = vld [vmem:[#allocation5 + $0xc8] sm:$0xff]  ;;  %v667_v31 = vld [vmem:[#allocation5 + $0xc0] sm:$0xff]  ;;  %v132_v34 = vld [vmem:[#allocation2 + $0x4] sm:$0x3]  ;;  %v321_v37 = vpack.c.bf16 %v320_v33, %v320_v33 }
  0x1a   :  { %372 = vmatpush.bf16.msra.mxu3 %v868_v11  ;;  %v130_v35 = vld [vmem:[#allocation2] sm:$0x3]  ;;  %v133_v38 = vpack.c.bf16 %v132_v34, %v132_v34  ;;  %v393_v40 = vld [vmem:[#allocation2 + $0x6] sm:$0x3]  ;;  %v391_v41 = vld [vmem:[#allocation2 + $0x2] sm:$0x3] }
  0x1b   :  { %185 = vmatpush.bf16.msra.mxu0 %v872_v12  ;;  %v131_v39 = vpack.c.bf16 %v130_v35, %v130_v35  ;;  %v421_v42 = vld [vmem:[#allocation2 + $0xa] sm:$0x3]  ;;  %v437_v43 = vld [vmem:[#allocation2 + $0xe] sm:$0x3]  ;;  %v394_v44 = vpack.c.bf16 %v393_v40, %v393_v40  ;;  %v392_v45 = vpack.c.bf16 %v391_v41, %v391_v41  ;;  %v470_v49 = vld [vmem:[#allocation7 + $0x70] sm:$0xff] }
  0x1c   :  { %246 = vmatpush.bf16.msra.mxu1 %v874_v13  ;;  %v422_v46 = vpack.c.bf16 %v421_v42, %v421_v42  ;;  %v438_v47 = vpack.c.bf16 %v437_v43, %v437_v43  ;;  %v471_v48 = vld [vmem:[#allocation7 + $0x78] sm:$0xff]  ;;  %v469_v50 = vld [vmem:[#allocation7 + $0x68] sm:$0xff]  ;;  %v468_v51 = vld [vmem:[#allocation7 + $0x60] sm:$0xff] }
  0x1d   :  { %309 = vmatpush.bf16.msra.mxu2 %v878_v14  ;;  %v467_v52 = vld [vmem:[#allocation7 + $0x58] sm:$0xff]  ;;  %v466_v53 = vld [vmem:[#allocation7 + $0x50] sm:$0xff]  ;;  %v465_v54 = vld [vmem:[#allocation7 + $0x48] sm:$0xff] }
  0x1e   :  { %373 = vmatpush.bf16.msra.mxu3 %v880_v15  ;;  %v464_v55 = vld [vmem:[#allocation7 + $0x40] sm:$0xff]  ;;  %v463_v58 = vld [vmem:[#allocation7 + $0x38] sm:$0xff]  ;;  %v462_v61 = vld [vmem:[#allocation7 + $0x30] sm:$0xff] }
  0x1f   :  { %186 = vmatpush.bf16.msra.mxu0 %v654_v16  ;;  %v461_v62 = vld [vmem:[#allocation7 + $0x28] sm:$0xff] }
  0x20   :  { %247 = vmatpush.bf16.msra.mxu1 %v646_v17 }
  0x21   :  { %310 = vmatpush.bf16.msra.mxu2 %v662_v18 }
  0x22   :  { %374 = vmatpush.bf16.msra.mxu3 %v670_v19 }
  0x23   :  { %187 = vmatpush.bf16.msra.mxu0 %v653_v20 }
  0x24   :  { %248 = vmatpush.bf16.msra.mxu1 %v645_v21 }
  0x25   :  { %311 = vmatpush.bf16.msra.mxu2 %v661_v22 }
  0x26   :  { %375 = vmatpush.bf16.msra.mxu3 %v669_v23 }
  0x27   :  { %188 = vmatpush.bf16.msra.mxu0 %v652_v24 }
  0x28   :  { %249 = vmatpush.bf16.msra.mxu1 %v644_v25 }
  0x29   :  { %312 = vmatpush.bf16.msra.mxu2 %v660_v26 }
  0x2a   :  { %376 = vmatpush.bf16.msra.mxu3 %v668_v27 }
  0x2b   :  { %189 = vmatpush.bf16.msra.mxu0 %v651_v28 }
  0x2c   :  { %250 = vmatpush.bf16.msra.mxu1 %v643_v29 }
  0x2d   :  { %313 = vmatpush.bf16.msra.mxu2 %v659_v30 }
  0x2e   :  { %377 = vmatpush.bf16.msra.mxu3 %v667_v31  ;;  %190 = vmatmul.bf16.vlgmr.msra.gmra.mxu0 %v133_v38 }
  0x2f   :  { %395 = vmatpush.bf16.msrb.mxu0 %v838_v0  ;;  %251 = vmatmul.bf16.vlgmr.msra.gmra.mxu1 %v131_v39 }
  0x30   :  { %408 = vmatpush.bf16.msrb.mxu1 %v840_v1  ;;  %314 = vmatmul.bf16.vlgmr.msra.gmra.mxu2 %v257_v36  ;;  %v460_v1 = vld [vmem:[#allocation7 + $0x20] sm:$0xff] }
  0x31   :  { %423 = vmatpush.bf16.msrb.mxu2 %v842_v2  ;;  %378 = vmatmul.bf16.vlgmr.msra.gmra.mxu3 %v321_v37  ;;  %v459_v2 = vld [vmem:[#allocation7 + $0x18] sm:$0xff] }
  0x32   :  { %439 = vmatpush.bf16.msrb.mxu3 %v844_v3  ;;  %v458_v3 = vld [vmem:[#allocation7 + $0x10] sm:$0xff] }
  0x33   :  { %396 = vmatpush.bf16.msrb.mxu0 %v848_v4 }
  0x34   :  { %409 = vmatpush.bf16.msrb.mxu1 %v850_v5 }
  0x35   :  { %424 = vmatpush.bf16.msrb.mxu2 %v854_v6  ;;  %v457_v6 = vld [vmem:[#allocation7 + $0x8] sm:$0xff] }
  0x36   :  { %440 = vmatpush.bf16.msrb.mxu3 %v856_v7  ;;  %v456_v7 = vld [vmem:[#allocation7] sm:$0xff] }
  0x37   :  { %397 = vmatpush.bf16.msrb.mxu0 %v860_v8 }
  0x38   :  { %410 = vmatpush.bf16.msrb.mxu1 %v862_v9 }
  0x39   :  { %425 = vmatpush.bf16.msrb.mxu2 %v866_v10 }
  0x3a   :  { %441 = vmatpush.bf16.msrb.mxu3 %v868_v11 }
  0x3b   :  { %398 = vmatpush.bf16.msrb.mxu0 %v872_v12 }
  0x3c   :  { %411 = vmatpush.bf16.msrb.mxu1 %v874_v13 }
  0x3d   :  { %426 = vmatpush.bf16.msrb.mxu2 %v878_v14  ;;  %v683_v14 = vld [vmem:[%s913_s2] ss:$0 sm:$0xff]  ;;  %s798_s2 = smov [#allocation8]  }
  0x3e   :  { %442 = vmatpush.bf16.msrb.mxu3 %v880_v15  ;;  %s502_s13 = sshll.u32 %s798_s2, 4  ;;  %s503_s13 = int_to_ptr.vmem [resolvable:$true] %s502_s13 }
  0x3f   :  { %399 = vmatpush.bf16.msrb.mxu0 %v654_v16 }
  0x40   :  { %412 = vmatpush.bf16.msrb.mxu1 %v646_v17 }
  0x41   :  { %427 = vmatpush.bf16.msrb.mxu2 %v662_v18 }
  0x42   :  { %443 = vmatpush.bf16.msrb.mxu3 %v670_v19 }
  0x43   :  { %400 = vmatpush.bf16.msrb.mxu0 %v653_v20 }
  0x44   :  { %413 = vmatpush.bf16.msrb.mxu1 %v645_v21 }
  0x45   :  { %428 = vmatpush.bf16.msrb.mxu2 %v661_v22 }
  0x46   :  { %444 = vmatpush.bf16.msrb.mxu3 %v669_v23 }
  0x47   :  { %401 = vmatpush.bf16.msrb.mxu0 %v652_v24 }
  0x48   :  { %414 = vmatpush.bf16.msrb.mxu1 %v644_v25 }
  0x49   :  { %429 = vmatpush.bf16.msrb.mxu2 %v660_v26 }
  0x4a   :  { %445 = vmatpush.bf16.msrb.mxu3 %v668_v27 }
  0x4b   :  { %402 = vmatpush.bf16.msrb.mxu0 %v651_v28  ;;  %v684_v28 = vld [vmem:[%s915_s4] ss:$0 sm:$0xff] }
  0x4c   :  { %415 = vmatpush.bf16.msrb.mxu1 %v643_v29 }
  0x4d   :  { %430 = vmatpush.bf16.msrb.mxu2 %v659_v30 }
  0x4e   :  { %446 = vmatpush.bf16.msrb.mxu3 %v667_v31  ;;  %403 = vmatmul.bf16.vlgmr.msrb.gmra.mxu0 %v394_v44 }
  0x4f   :  { %416 = vmatmul.bf16.vlgmr.msrb.gmra.mxu1 %v392_v45  ;;  %476 = vmatpush.msra.mxu0 %v471_v48 }
  0x50   :  { %431 = vmatmul.bf16.vlgmr.msrb.gmra.mxu2 %v422_v46 }
  0x51   :  { %447 = vmatmul.bf16.vlgmr.msrb.gmra.mxu3 %v438_v47  ;;  %477 = vmatpush.msra.mxu0 %v470_v49 }
  0x53   :  { %478 = vmatpush.msra.mxu0 %v469_v50 }
  0x55   :  { %479 = vmatpush.msra.mxu0 %v468_v51 }
  0x57   :  { %480 = vmatpush.msra.mxu0 %v467_v52 }
  0x59   :  { %481 = vmatpush.msra.mxu0 %v466_v53 }
  0x5b   :  { %482 = vmatpush.msra.mxu0 %v465_v54 }
  0x5d   :  { %483 = vmatpush.msra.mxu0 %v464_v55 }
  0x5f   :  { %484 = vmatpush.msra.mxu0 %v463_v58 }
  0x61   :  { %485 = vmatpush.msra.mxu0 %v462_v61 }
  0x63   :  { %486 = vmatpush.msra.mxu0 %v461_v62 }
  0x65   :  { %487 = vmatpush.msra.mxu0 %v460_v1 }
  0x67   :  { %488 = vmatpush.msra.mxu0 %v459_v2 }
  0x69   :  { %489 = vmatpush.msra.mxu0 %v458_v3 }
  0x6b   :  { %490 = vmatpush.msra.mxu0 %v457_v6 }
  0x6d   :  { %491 = vmatpush.msra.mxu0 %v456_v7 }
  0xab   :  { %v191_v56 = vpop.f32.mrf.mxu0 }
  0xac   :  { %v252_v57 = vpop.f32.mrf.mxu1 }
  0xad   :  { %v253_v8 = vadd.f32 %v252_v57, %v191_v56 }
  0xb3   :  { %v315_v59 = vpop.f32.mrf.mxu2  ;;  %v193_v63 = vpop.f32.mrf.mxu0 }
  0xb4   :  { %v379_v60 = vpop.f32.mrf.mxu3  ;;  %v254_v0 = vpop.f32.mrf.mxu1  ;;  %v319_v11 = vadd.f32 %v315_v59, %v253_v8 }
  0xb6   :  { %v383_v13 = vadd.f32 %v379_v60, %v319_v11 }
  0xb8   :  { %v388_v20 = vadd.f32 %v683_v14, %v383_v13 }
  0xba   :  { %685 = vtanh.f32 %v388_v20 }
  0xbb   :  { %v317_v4 = vpop.f32.mrf.mxu2 }
  0xbc   :  { %v381_v5 = vpop.f32.mrf.mxu3 }
  0xc0   :  { %v686_v25 = vpop.eup %685 }
  0xcb   :  { %v404_v9 = vpop.f32.mrf.mxu0 }
  0xcc   :  { %v417_v10 = vpop.f32.mrf.mxu1 }
  0xcd   :  { %v418_v12 = vadd.f32 %v417_v10, %v404_v9 }
  0xd3   :  { %v432_v15 = vpop.f32.mrf.mxu2  ;;  %v406_v18 = vpop.f32.mrf.mxu0 }
  0xd4   :  { %v448_v16 = vpop.f32.mrf.mxu3  ;;  %v436_v17 = vadd.f32 %v432_v15, %v418_v12  ;;  %v419_v19 = vpop.f32.mrf.mxu1 }
  0xd6   :  { %v452_v21 = vadd.f32 %v448_v16, %v436_v17 }
  0xd8   :  { %v453_v22 = vadd.f32 %v683_v14, %v452_v21 }
  0xda   :  { %687 = vtanh.f32 %v453_v22 }
  0xdb   :  { %v434_v23 = vpop.f32.mrf.mxu2 }
  0xdc   :  { %v450_v24 = vpop.f32.mrf.mxu3 }
  0xe0   :  { %v688_v26 = vpop.eup %687 }
  0xe1   :  { %v455_v27 = vadd.f32 %v688_v26, %v686_v25 }
  0xe3   :  { %492 = vmatmul.f32.vlgmr.msra.gmra.mxu0 %v455_v27 }
 0x160   :  { %v493_v29 = vpop.f32.mrf.mxu0 }
 0x161   :  { %v494_v30 = vadd.f32 %v684_v28, %v493_v29 }
 0x163   :  { %496 = vst [vmem:[#allocation8] sm:$0x3] %v494_v30 }
 0x164   :  { %507 = dma.vmem_to_hbm [thread:$0]  %s503_s13, 32, %s505_s16, [#allocation4]  }
 0x165   :  { %789 = dma.done.wait [#allocation4], 32  }
 0x166   :  { %790 = vsyncadd [#allocation4], 4294967264 }
 0x167   :  { %512 = vsyncpa [#allocation3], 1 }
 0x168   :  { %513 = vsyncpa [#allocation6], 1 }
 0x169   :  { %514 = vsyncpa [#allocation4], 1 }

</bundles_post_ra>
